<compile_context>
chip_gen: v7x
topology: tpu7x:2x2x1
jax: 0.10.0
libtpu: 0.0.40
codegen_flags: <defaults>
</compile_context>

<pallas_src>
import functools

import jax
import jax.numpy as jnp
import numpy as np
from jax.experimental import pallas as pl
from jax.experimental.pallas import tpu as pltpu


def _double_conv_kernel(mask_ref, x_ref, w1_ref, s1_ref, b1_ref,
                        w2_ref, s2_ref, b2_ref, o_ref, *, width):
    """Fused (conv3x3 -> BN(eval) -> ReLU) x 2 on one image.

    mask_ref: (9, H*W)        per-tap validity masks (emulate zero padding)
    x_ref:    (1, Cin, H*W)   NCHW input with flattened spatial (lane-dense)
    w*_ref:   (Cout, 9*Cin)   im2col weights, bf16
    s*_ref:   (Cout, 1)       folded BN scale = gamma / sqrt(var + eps)
    b*_ref:   (Cout, 1)       folded bias = (conv_b - mean) * scale + beta
    o_ref:    (1, Cout, H*W)  NCHW output with flattened spatial
    """

    def roll_lanes(a, shift):
        # result[..., i] = a[..., (i + shift) % n]   (static shift)
        n = a.shape[-1]
        s = (-shift) % n
        if s == 0:
            return a
        return jnp.concatenate([a[:, n - s:], a[:, :n - s]], axis=-1)

    def conv_bn_relu(a, w_r, s_r, b_r):
        # a: (C, H*W) f32 feature map.  Single K=9*C bf16 matmul on the MXU.
        taps = []
        t = 0
        for dy in range(3):
            for dx in range(3):
                off = (dy - 1) * width + (dx - 1)        # flat source offset
                taps.append(roll_lanes(a, off) * mask_ref[t])
                t += 1
        patch = jnp.concatenate(taps, axis=0).astype(jnp.bfloat16)  # (9*C, H*W)
        y = jnp.dot(w_r[...], patch, preferred_element_type=jnp.float32)
        y = y * s_r[...] + b_r[...]          # fused BatchNorm (eval mode), f32
        return jnp.maximum(y, 0.0)           # ReLU

    a1 = conv_bn_relu(x_ref[0], w1_ref, s1_ref, b1_ref)   # stays in VMEM/vregs
    a2 = conv_bn_relu(a1, w2_ref, s2_ref, b2_ref)
    o_ref[0] = a2.astype(o_ref.dtype)


def _round_up(n, m):
    return (n + m - 1) // m * m


def _fold_bn(conv_b, gamma, beta, mean, var, eps=1e-5):
    scale = gamma / jnp.sqrt(var + eps)
    bias = (conv_b - mean) * scale + beta
    return scale.astype(jnp.float32), bias.astype(jnp.float32)


def _make_tap_masks(H, W):
    """mask[t, r*W+c] = 1 iff source pixel (r+dy-1, c+dx-1) lies inside the image."""
    m = np.zeros((9, H, W), np.float32)
    t = 0
    for dy in range(3):
        for dx in range(3):
            r0, r1 = max(0, 1 - dy), min(H, H + 1 - dy)
            c0, c1 = max(0, 1 - dx), min(W, W + 1 - dx)
            m[t, r0:r1, c0:c1] = 1.0
            t += 1
    return m.reshape(9, H * W)


def _im2col_weights(w_oihw, cin_p, cout_p):
    """OIHW (Cout, Cin, 3, 3) -> (Cout_p, 9*Cin_p) bf16, tap-major columns."""
    cout, cin = w_oihw.shape[0], w_oihw.shape[1]
    w = jnp.zeros((cout_p, cin_p, 3, 3), jnp.float32).at[:cout, :cin].set(
        w_oihw.astype(jnp.float32))
    w = jnp.transpose(w, (0, 2, 3, 1))               # (Cout_p, 3, 3, Cin_p)
    return w.reshape(cout_p, 9 * cin_p).astype(jnp.bfloat16)


def _pad_vec(v, n_p):
    return jnp.zeros((n_p,), jnp.float32).at[: v.shape[0]].set(v.astype(jnp.float32))


@jax.jit
def double_conv_forward(x_nchw, params):
    """Forward of DoubleConv (eval-mode BN). Input/output are NCHW like PyTorch."""
    p = params
    B, Cin, H, W = x_nchw.shape
    Cout = p["w1"].shape[0]
    HW = H * W
    Cin_p = _round_up(Cin, 8)
    Cout_p = _round_up(Cout, 8)

    # Free reshape (stays NCHW, spatial flattened onto lanes); pad channels to
    # a sublane multiple so all in-kernel sublane concats are tile-aligned.
    x_flat = x_nchw.reshape(B, Cin, HW).astype(jnp.float32)
    if Cin_p != Cin:
        x_flat = jnp.pad(x_flat, ((0, 0), (0, Cin_p - Cin), (0, 0)))

    w1m = _im2col_weights(p["w1"], Cin_p, Cout_p)
    w2m = _im2col_weights(p["w2"], Cout_p, Cout_p)
    s1, bb1 = _fold_bn(p["b1"], p["g1"], p["be1"], p["m1"], p["v1"])
    s2, bb2 = _fold_bn(p["b2"], p["g2"], p["be2"], p["m2"], p["v2"])
    # Padded channels get scale=0 / bias=0 so they stay exactly zero.
    s1 = _pad_vec(s1, Cout_p).reshape(Cout_p, 1)
    bb1 = _pad_vec(bb1, Cout_p).reshape(Cout_p, 1)
    s2 = _pad_vec(s2, Cout_p).reshape(Cout_p, 1)
    bb2 = _pad_vec(bb2, Cout_p).reshape(Cout_p, 1)

    masks = jnp.asarray(_make_tap_masks(H, W))       # (9, H*W) f32 constant

    out_flat = pl.pallas_call(
        functools.partial(_double_conv_kernel, width=W),
        out_shape=jax.ShapeDtypeStruct((B, Cout_p, HW), x_nchw.dtype),
        grid=(B,),
        in_specs=[
            pl.BlockSpec((9, HW), lambda b: (0, 0)),
            pl.BlockSpec((1, Cin_p, HW), lambda b: (b, 0, 0)),
            pl.BlockSpec((Cout_p, 9 * Cin_p), lambda b: (0, 0)),
            pl.BlockSpec((Cout_p, 1), lambda b: (0, 0)),
            pl.BlockSpec((Cout_p, 1), lambda b: (0, 0)),
            pl.BlockSpec((Cout_p, 9 * Cout_p), lambda b: (0, 0)),
            pl.BlockSpec((Cout_p, 1), lambda b: (0, 0)),
            pl.BlockSpec((Cout_p, 1), lambda b: (0, 0)),
        ],
        out_specs=pl.BlockSpec((1, Cout_p, HW), lambda b: (b, 0, 0)),
        compiler_params=pltpu.CompilerParams(dimension_semantics=("parallel",)),
    )(masks, x_flat, w1m, s1, bb1, w2m, s2, bb2)

    # Drop padded output channels (no-op when Cout is already a multiple of 8)
    # and un-flatten the spatial dims (free reshape).
    return out_flat[:, :Cout, :].reshape(B, Cout, H, W)


def make_double_conv_params(key, in_channels, out_channels):
    """Deterministic synthetic params matching nn.Conv2d / nn.BatchNorm2d shapes."""
    ks = jax.random.split(key, 12)
    p = {}
    # Conv2d #1: weight (Cout, Cin, 3, 3), bias (Cout,)
    p["w1"] = 0.1 * jax.random.normal(ks[0], (out_channels, in_channels, 3, 3), jnp.float32)
    p["b1"] = 0.05 * jax.random.normal(ks[1], (out_channels,), jnp.float32)
    # BatchNorm2d #1 (eval): gamma, beta, running_mean, running_var
    p["g1"] = 1.0 + 0.1 * jax.random.normal(ks[2], (out_channels,), jnp.float32)
    p["be1"] = 0.1 * jax.random.normal(ks[3], (out_channels,), jnp.float32)
    p["m1"] = 0.1 * jax.random.normal(ks[4], (out_channels,), jnp.float32)
    p["v1"] = 0.8 + 0.4 * jax.random.uniform(ks[5], (out_channels,), jnp.float32)
    # Conv2d #2
    p["w2"] = 0.1 * jax.random.normal(ks[6], (out_channels, out_channels, 3, 3), jnp.float32)
    p["b2"] = 0.05 * jax.random.normal(ks[7], (out_channels,), jnp.float32)
    # BatchNorm2d #2
    p["g2"] = 1.0 + 0.1 * jax.random.normal(ks[8], (out_channels,), jnp.float32)
    p["be2"] = 0.1 * jax.random.normal(ks[9], (out_channels,), jnp.float32)
    p["m2"] = 0.1 * jax.random.normal(ks[10], (out_channels,), jnp.float32)
    p["v2"] = 0.8 + 0.4 * jax.random.uniform(ks[11], (out_channels,), jnp.float32)
    return p


def _reference_forward(x_nchw, params):
    """Pure-JAX f32 reference (lax.conv) matching the PyTorch module (eval BN)."""
    p = params

    def block(x, w, b, g, be, m, v):
        y = jax.lax.conv_general_dilated(
            x, w, window_strides=(1, 1), padding=((1, 1), (1, 1)),
            dimension_numbers=("NCHW", "OIHW", "NCHW"),
        ) + b[None, :, None, None]
        y = (y - m[None, :, None, None]) / jnp.sqrt(v[None, :, None, None] + 1e-5)
        y = y * g[None, :, None, None] + be[None, :, None, None]
        return jnp.maximum(y, 0.0)

    x = block(x_nchw, p["w1"], p["b1"], p["g1"], p["be1"], p["m1"], p["v1"])
    x = block(x, p["w2"], p["b2"], p["g2"], p["be2"], p["m2"], p["v2"])
    return x


if __name__ == "__main__":
    B, Cin, Cout, H, W = 2, 4, 8, 16, 16
    key = jax.random.PRNGKey(0)
    kx, kp = jax.random.split(key)
    x = jax.random.normal(kx, (B, Cin, H, W), jnp.float32)   # NCHW like PyTorch
    params = make_double_conv_params(kp, Cin, Cout)

    out = double_conv_forward(x, params)
    out = jax.block_until_ready(out)
    assert out.shape == (B, Cout, H, W)

    ref = _reference_forward(x, params)
    # Kernel feeds bf16 operands to the MXU (f32 accumulation/epilogue), so use
    # a bf16-appropriate tolerance against the f32 reference.
    np.testing.assert_allclose(np.asarray(out), np.asarray(ref), rtol=5e-2, atol=5e-2)

    print("KERNEL_OK")
</pallas_src>

<mosaic_0001>
module attributes {stable_mosaic.version = 11 : i64} {
  func.func @_double_conv_kernel(%arg0: i32, %arg1: memref<9x256xf32, #tpu.memory_space<vmem>>, %arg2: memref<1x8x256xf32, #tpu.memory_space<vmem>>, %arg3: memref<8x72xbf16, #tpu.memory_space<vmem>>, %arg4: memref<8x1xf32, #tpu.memory_space<vmem>>, %arg5: memref<8x1xf32, #tpu.memory_space<vmem>>, %arg6: memref<8x72xbf16, #tpu.memory_space<vmem>>, %arg7: memref<8x1xf32, #tpu.memory_space<vmem>>, %arg8: memref<8x1xf32, #tpu.memory_space<vmem>>, %arg9: memref<1x8x256xf32, #tpu.memory_space<vmem>>) attributes {dimension_semantics = [#tpu.dimension_semantics<parallel>], iteration_bounds = array<i64: 2>, scalar_prefetch = 0 : i64, scratch_operands = 0 : i64, tpu.core_type = #tpu.core_type<tc>, window_params = [{pipeline_mode = #tpu.pipeline_mode<synchronous>, transform_indices = @transform_0, window_bounds = array<i64: 9, 256>}, {transform_indices = @transform_1, window_bounds = array<i64: 1, 8, 256>}, {pipeline_mode = #tpu.pipeline_mode<synchronous>, transform_indices = @transform_2, window_bounds = array<i64: 8, 72>}, {pipeline_mode = #tpu.pipeline_mode<synchronous>, transform_indices = @transform_3, window_bounds = array<i64: 8, 1>}, {pipeline_mode = #tpu.pipeline_mode<synchronous>, transform_indices = @transform_4, window_bounds = array<i64: 8, 1>}, {pipeline_mode = #tpu.pipeline_mode<synchronous>, transform_indices = @transform_5, window_bounds = array<i64: 8, 72>}, {pipeline_mode = #tpu.pipeline_mode<synchronous>, transform_indices = @transform_6, window_bounds = array<i64: 8, 1>}, {pipeline_mode = #tpu.pipeline_mode<synchronous>, transform_indices = @transform_7, window_bounds = array<i64: 8, 1>}, {transform_indices = @transform_8, window_bounds = array<i64: 1, 8, 256>}]} {
    %c0 = arith.constant 0 : index
    %c0_0 = arith.constant 0 : index
    %c0_1 = arith.constant 0 : index
    %0 = vector.load %arg2[%c0, %c0_0, %c0_1] : memref<1x8x256xf32, #tpu.memory_space<vmem>>, vector<1x8x256xf32>
    %1 = vector.shape_cast %0 : vector<1x8x256xf32> to vector<8x256xf32>
    %2 = vector.extract_strided_slice %1 {offsets = [0, 239], sizes = [8, 17], strides = [1, 1]} : vector<8x256xf32> to vector<8x17xf32>
    %3 = vector.extract_strided_slice %1 {offsets = [0, 0], sizes = [8, 239], strides = [1, 1]} : vector<8x256xf32> to vector<8x239xf32>
    %4 = tpu.concatenate %2, %3 in 1 : vector<8x17xf32>, vector<8x239xf32> -> vector<8x256xf32>
    %c0_2 = arith.constant 0 : index
    %c0_3 = arith.constant 0 : index
    %5 = vector.load %arg1[%c0_2, %c0_3] : memref<9x256xf32, #tpu.memory_space<vmem>>, vector<1x256xf32>
    %6 = vector.shape_cast %5 : vector<1x256xf32> to vector<256xf32>
    %7 = vector.shape_cast %6 : vector<256xf32> to vector<1x256xf32>
    %8 = vector.broadcast %7 : vector<1x256xf32> to vector<8x256xf32>
    %9 = arith.mulf %4, %8 : vector<8x256xf32>
    %10 = vector.extract_strided_slice %1 {offsets = [0, 240], sizes = [8, 16], strides = [1, 1]} : vector<8x256xf32> to vector<8x16xf32>
    %11 = vector.extract_strided_slice %1 {offsets = [0, 0], sizes = [8, 240], strides = [1, 1]} : vector<8x256xf32> to vector<8x240xf32>
    %12 = tpu.concatenate %10, %11 in 1 : vector<8x16xf32>, vector<8x240xf32> -> vector<8x256xf32>
    %c1 = arith.constant 1 : index
    %c0_4 = arith.constant 0 : index
    %13 = vector.load %arg1[%c1, %c0_4] : memref<9x256xf32, #tpu.memory_space<vmem>>, vector<1x256xf32>
    %14 = vector.shape_cast %13 : vector<1x256xf32> to vector<256xf32>
    %15 = vector.shape_cast %14 : vector<256xf32> to vector<1x256xf32>
    %16 = vector.broadcast %15 : vector<1x256xf32> to vector<8x256xf32>
    %17 = arith.mulf %12, %16 : vector<8x256xf32>
    %18 = vector.extract_strided_slice %1 {offsets = [0, 241], sizes = [8, 15], strides = [1, 1]} : vector<8x256xf32> to vector<8x15xf32>
    %19 = vector.extract_strided_slice %1 {offsets = [0, 0], sizes = [8, 241], strides = [1, 1]} : vector<8x256xf32> to vector<8x241xf32>
    %20 = tpu.concatenate %18, %19 in 1 : vector<8x15xf32>, vector<8x241xf32> -> vector<8x256xf32>
    %c2 = arith.constant 2 : index
    %c0_5 = arith.constant 0 : index
    %21 = vector.load %arg1[%c2, %c0_5] : memref<9x256xf32, #tpu.memory_space<vmem>>, vector<1x256xf32>
    %22 = vector.shape_cast %21 : vector<1x256xf32> to vector<256xf32>
    %23 = vector.shape_cast %22 : vector<256xf32> to vector<1x256xf32>
    %24 = vector.broadcast %23 : vector<1x256xf32> to vector<8x256xf32>
    %25 = arith.mulf %20, %24 : vector<8x256xf32>
    %26 = vector.extract_strided_slice %1 {offsets = [0, 255], sizes = [8, 1], strides = [1, 1]} : vector<8x256xf32> to vector<8x1xf32>
    %27 = vector.extract_strided_slice %1 {offsets = [0, 0], sizes = [8, 255], strides = [1, 1]} : vector<8x256xf32> to vector<8x255xf32>
    %28 = tpu.concatenate %26, %27 in 1 : vector<8x1xf32>, vector<8x255xf32> -> vector<8x256xf32>
    %c3 = arith.constant 3 : index
    %c0_6 = arith.constant 0 : index
    %29 = vector.load %arg1[%c3, %c0_6] : memref<9x256xf32, #tpu.memory_space<vmem>>, vector<1x256xf32>
    %30 = vector.shape_cast %29 : vector<1x256xf32> to vector<256xf32>
    %31 = vector.shape_cast %30 : vector<256xf32> to vector<1x256xf32>
    %32 = vector.broadcast %31 : vector<1x256xf32> to vector<8x256xf32>
    %33 = arith.mulf %28, %32 : vector<8x256xf32>
    %c4 = arith.constant 4 : index
    %c0_7 = arith.constant 0 : index
    %34 = vector.load %arg1[%c4, %c0_7] : memref<9x256xf32, #tpu.memory_space<vmem>>, vector<1x256xf32>
    %35 = vector.shape_cast %34 : vector<1x256xf32> to vector<256xf32>
    %36 = vector.shape_cast %35 : vector<256xf32> to vector<1x256xf32>
    %37 = vector.broadcast %36 : vector<1x256xf32> to vector<8x256xf32>
    %38 = arith.mulf %1, %37 : vector<8x256xf32>
    %39 = vector.extract_strided_slice %1 {offsets = [0, 1], sizes = [8, 255], strides = [1, 1]} : vector<8x256xf32> to vector<8x255xf32>
    %40 = vector.extract_strided_slice %1 {offsets = [0, 0], sizes = [8, 1], strides = [1, 1]} : vector<8x256xf32> to vector<8x1xf32>
    %41 = tpu.concatenate %39, %40 in 1 : vector<8x255xf32>, vector<8x1xf32> -> vector<8x256xf32>
    %c5 = arith.constant 5 : index
    %c0_8 = arith.constant 0 : index
    %42 = vector.load %arg1[%c5, %c0_8] : memref<9x256xf32, #tpu.memory_space<vmem>>, vector<1x256xf32>
    %43 = vector.shape_cast %42 : vector<1x256xf32> to vector<256xf32>
    %44 = vector.shape_cast %43 : vector<256xf32> to vector<1x256xf32>
    %45 = vector.broadcast %44 : vector<1x256xf32> to vector<8x256xf32>
    %46 = arith.mulf %41, %45 : vector<8x256xf32>
    %47 = vector.extract_strided_slice %1 {offsets = [0, 15], sizes = [8, 241], strides = [1, 1]} : vector<8x256xf32> to vector<8x241xf32>
    %48 = vector.extract_strided_slice %1 {offsets = [0, 0], sizes = [8, 15], strides = [1, 1]} : vector<8x256xf32> to vector<8x15xf32>
    %49 = tpu.concatenate %47, %48 in 1 : vector<8x241xf32>, vector<8x15xf32> -> vector<8x256xf32>
    %c6 = arith.constant 6 : index
    %c0_9 = arith.constant 0 : index
    %50 = vector.load %arg1[%c6, %c0_9] : memref<9x256xf32, #tpu.memory_space<vmem>>, vector<1x256xf32>
    %51 = vector.shape_cast %50 : vector<1x256xf32> to vector<256xf32>
    %52 = vector.shape_cast %51 : vector<256xf32> to vector<1x256xf32>
    %53 = vector.broadcast %52 : vector<1x256xf32> to vector<8x256xf32>
    %54 = arith.mulf %49, %53 : vector<8x256xf32>
    %55 = vector.extract_strided_slice %1 {offsets = [0, 16], sizes = [8, 240], strides = [1, 1]} : vector<8x256xf32> to vector<8x240xf32>
    %56 = vector.extract_strided_slice %1 {offsets = [0, 0], sizes = [8, 16], strides = [1, 1]} : vector<8x256xf32> to vector<8x16xf32>
    %57 = tpu.concatenate %55, %56 in 1 : vector<8x240xf32>, vector<8x16xf32> -> vector<8x256xf32>
    %c7 = arith.constant 7 : index
    %c0_10 = arith.constant 0 : index
    %58 = vector.load %arg1[%c7, %c0_10] : memref<9x256xf32, #tpu.memory_space<vmem>>, vector<1x256xf32>
    %59 = vector.shape_cast %58 : vector<1x256xf32> to vector<256xf32>
    %60 = vector.shape_cast %59 : vector<256xf32> to vector<1x256xf32>
    %61 = vector.broadcast %60 : vector<1x256xf32> to vector<8x256xf32>
    %62 = arith.mulf %57, %61 : vector<8x256xf32>
    %63 = vector.extract_strided_slice %1 {offsets = [0, 17], sizes = [8, 239], strides = [1, 1]} : vector<8x256xf32> to vector<8x239xf32>
    %64 = vector.extract_strided_slice %1 {offsets = [0, 0], sizes = [8, 17], strides = [1, 1]} : vector<8x256xf32> to vector<8x17xf32>
    %65 = tpu.concatenate %63, %64 in 1 : vector<8x239xf32>, vector<8x17xf32> -> vector<8x256xf32>
    %c8 = arith.constant 8 : index
    %c0_11 = arith.constant 0 : index
    %66 = vector.load %arg1[%c8, %c0_11] : memref<9x256xf32, #tpu.memory_space<vmem>>, vector<1x256xf32>
    %67 = vector.shape_cast %66 : vector<1x256xf32> to vector<256xf32>
    %68 = vector.shape_cast %67 : vector<256xf32> to vector<1x256xf32>
    %69 = vector.broadcast %68 : vector<1x256xf32> to vector<8x256xf32>
    %70 = arith.mulf %65, %69 : vector<8x256xf32>
    %71 = tpu.concatenate %9, %17, %25, %33, %38, %46, %54, %62, %70 in 0 : vector<8x256xf32>, vector<8x256xf32>, vector<8x256xf32>, vector<8x256xf32>, vector<8x256xf32>, vector<8x256xf32>, vector<8x256xf32>, vector<8x256xf32>, vector<8x256xf32> -> vector<72x256xf32>
    %72 = arith.truncf %71 : vector<72x256xf32> to vector<72x256xbf16>
    %c0_12 = arith.constant 0 : index
    %c0_13 = arith.constant 0 : index
    %73 = vector.load %arg3[%c0_12, %c0_13] : memref<8x72xbf16, #tpu.memory_space<vmem>>, vector<8x72xbf16>
    %cst = arith.constant dense<0.000000e+00> : vector<8x256xf32>
    %74 = tpu.matmul %73, %72, %cst {dimension_numbers = #tpu.dot_dimension_numbers<[1], [0], [0], [1], [0, 0, 1, 1], [], []>} : vector<8x72xbf16>, vector<72x256xbf16>, vector<8x256xf32> -> vector<8x256xf32>
    %c0_14 = arith.constant 0 : index
    %c0_15 = arith.constant 0 : index
    %75 = vector.load %arg4[%c0_14, %c0_15] : memref<8x1xf32, #tpu.memory_space<vmem>>, vector<8x1xf32>
    %76 = vector.broadcast %75 : vector<8x1xf32> to vector<8x256xf32>
    %77 = arith.mulf %74, %76 : vector<8x256xf32>
    %c0_16 = arith.constant 0 : index
    %c0_17 = arith.constant 0 : index
    %78 = vector.load %arg5[%c0_16, %c0_17] : memref<8x1xf32, #tpu.memory_space<vmem>>, vector<8x1xf32>
    %79 = vector.broadcast %78 : vector<8x1xf32> to vector<8x256xf32>
    %80 = arith.addf %77, %79 : vector<8x256xf32>
    %cst_18 = arith.constant 0.000000e+00 : f32
    %81 = vector.broadcast %cst_18 : f32 to vector<8x256xf32>
    %82 = arith.maximumf %80, %81 : vector<8x256xf32>
    %83 = vector.extract_strided_slice %82 {offsets = [0, 239], sizes = [8, 17], strides = [1, 1]} : vector<8x256xf32> to vector<8x17xf32>
    %84 = vector.extract_strided_slice %82 {offsets = [0, 0], sizes = [8, 239], strides = [1, 1]} : vector<8x256xf32> to vector<8x239xf32>
    %85 = tpu.concatenate %83, %84 in 1 : vector<8x17xf32>, vector<8x239xf32> -> vector<8x256xf32>
    %c0_19 = arith.constant 0 : index
    %c0_20 = arith.constant 0 : index
    %86 = vector.load %arg1[%c0_19, %c0_20] : memref<9x256xf32, #tpu.memory_space<vmem>>, vector<1x256xf32>
    %87 = vector.shape_cast %86 : vector<1x256xf32> to vector<256xf32>
    %88 = vector.shape_cast %87 : vector<256xf32> to vector<1x256xf32>
    %89 = vector.broadcast %88 : vector<1x256xf32> to vector<8x256xf32>
    %90 = arith.mulf %85, %89 : vector<8x256xf32>
    %91 = vector.extract_strided_slice %82 {offsets = [0, 240], sizes = [8, 16], strides = [1, 1]} : vector<8x256xf32> to vector<8x16xf32>
    %92 = vector.extract_strided_slice %82 {offsets = [0, 0], sizes = [8, 240], strides = [1, 1]} : vector<8x256xf32> to vector<8x240xf32>
    %93 = tpu.concatenate %91, %92 in 1 : vector<8x16xf32>, vector<8x240xf32> -> vector<8x256xf32>
    %c1_21 = arith.constant 1 : index
    %c0_22 = arith.constant 0 : index
    %94 = vector.load %arg1[%c1_21, %c0_22] : memref<9x256xf32, #tpu.memory_space<vmem>>, vector<1x256xf32>
    %95 = vector.shape_cast %94 : vector<1x256xf32> to vector<256xf32>
    %96 = vector.shape_cast %95 : vector<256xf32> to vector<1x256xf32>
    %97 = vector.broadcast %96 : vector<1x256xf32> to vector<8x256xf32>
    %98 = arith.mulf %93, %97 : vector<8x256xf32>
    %99 = vector.extract_strided_slice %82 {offsets = [0, 241], sizes = [8, 15], strides = [1, 1]} : vector<8x256xf32> to vector<8x15xf32>
    %100 = vector.extract_strided_slice %82 {offsets = [0, 0], sizes = [8, 241], strides = [1, 1]} : vector<8x256xf32> to vector<8x241xf32>
    %101 = tpu.concatenate %99, %100 in 1 : vector<8x15xf32>, vector<8x241xf32> -> vector<8x256xf32>
    %c2_23 = arith.constant 2 : index
    %c0_24 = arith.constant 0 : index
    %102 = vector.load %arg1[%c2_23, %c0_24] : memref<9x256xf32, #tpu.memory_space<vmem>>, vector<1x256xf32>
    %103 = vector.shape_cast %102 : vector<1x256xf32> to vector<256xf32>
    %104 = vector.shape_cast %103 : vector<256xf32> to vector<1x256xf32>
    %105 = vector.broadcast %104 : vector<1x256xf32> to vector<8x256xf32>
    %106 = arith.mulf %101, %105 : vector<8x256xf32>
    %107 = vector.extract_strided_slice %82 {offsets = [0, 255], sizes = [8, 1], strides = [1, 1]} : vector<8x256xf32> to vector<8x1xf32>
    %108 = vector.extract_strided_slice %82 {offsets = [0, 0], sizes = [8, 255], strides = [1, 1]} : vector<8x256xf32> to vector<8x255xf32>
    %109 = tpu.concatenate %107, %108 in 1 : vector<8x1xf32>, vector<8x255xf32> -> vector<8x256xf32>
    %c3_25 = arith.constant 3 : index
    %c0_26 = arith.constant 0 : index
    %110 = vector.load %arg1[%c3_25, %c0_26] : memref<9x256xf32, #tpu.memory_space<vmem>>, vector<1x256xf32>
    %111 = vector.shape_cast %110 : vector<1x256xf32> to vector<256xf32>
    %112 = vector.shape_cast %111 : vector<256xf32> to vector<1x256xf32>
    %113 = vector.broadcast %112 : vector<1x256xf32> to vector<8x256xf32>
    %114 = arith.mulf %109, %113 : vector<8x256xf32>
    %c4_27 = arith.constant 4 : index
    %c0_28 = arith.constant 0 : index
    %115 = vector.load %arg1[%c4_27, %c0_28] : memref<9x256xf32, #tpu.memory_space<vmem>>, vector<1x256xf32>
    %116 = vector.shape_cast %115 : vector<1x256xf32> to vector<256xf32>
    %117 = vector.shape_cast %116 : vector<256xf32> to vector<1x256xf32>
    %118 = vector.broadcast %117 : vector<1x256xf32> to vector<8x256xf32>
    %119 = arith.mulf %82, %118 : vector<8x256xf32>
    %120 = vector.extract_strided_slice %82 {offsets = [0, 1], sizes = [8, 255], strides = [1, 1]} : vector<8x256xf32> to vector<8x255xf32>
    %121 = vector.extract_strided_slice %82 {offsets = [0, 0], sizes = [8, 1], strides = [1, 1]} : vector<8x256xf32> to vector<8x1xf32>
    %122 = tpu.concatenate %120, %121 in 1 : vector<8x255xf32>, vector<8x1xf32> -> vector<8x256xf32>
    %c5_29 = arith.constant 5 : index
    %c0_30 = arith.constant 0 : index
    %123 = vector.load %arg1[%c5_29, %c0_30] : memref<9x256xf32, #tpu.memory_space<vmem>>, vector<1x256xf32>
    %124 = vector.shape_cast %123 : vector<1x256xf32> to vector<256xf32>
    %125 = vector.shape_cast %124 : vector<256xf32> to vector<1x256xf32>
    %126 = vector.broadcast %125 : vector<1x256xf32> to vector<8x256xf32>
    %127 = arith.mulf %122, %126 : vector<8x256xf32>
    %128 = vector.extract_strided_slice %82 {offsets = [0, 15], sizes = [8, 241], strides = [1, 1]} : vector<8x256xf32> to vector<8x241xf32>
    %129 = vector.extract_strided_slice %82 {offsets = [0, 0], sizes = [8, 15], strides = [1, 1]} : vector<8x256xf32> to vector<8x15xf32>
    %130 = tpu.concatenate %128, %129 in 1 : vector<8x241xf32>, vector<8x15xf32> -> vector<8x256xf32>
    %c6_31 = arith.constant 6 : index
    %c0_32 = arith.constant 0 : index
    %131 = vector.load %arg1[%c6_31, %c0_32] : memref<9x256xf32, #tpu.memory_space<vmem>>, vector<1x256xf32>
    %132 = vector.shape_cast %131 : vector<1x256xf32> to vector<256xf32>
    %133 = vector.shape_cast %132 : vector<256xf32> to vector<1x256xf32>
    %134 = vector.broadcast %133 : vector<1x256xf32> to vector<8x256xf32>
    %135 = arith.mulf %130, %134 : vector<8x256xf32>
    %136 = vector.extract_strided_slice %82 {offsets = [0, 16], sizes = [8, 240], strides = [1, 1]} : vector<8x256xf32> to vector<8x240xf32>
    %137 = vector.extract_strided_slice %82 {offsets = [0, 0], sizes = [8, 16], strides = [1, 1]} : vector<8x256xf32> to vector<8x16xf32>
    %138 = tpu.concatenate %136, %137 in 1 : vector<8x240xf32>, vector<8x16xf32> -> vector<8x256xf32>
    %c7_33 = arith.constant 7 : index
    %c0_34 = arith.constant 0 : index
    %139 = vector.load %arg1[%c7_33, %c0_34] : memref<9x256xf32, #tpu.memory_space<vmem>>, vector<1x256xf32>
    %140 = vector.shape_cast %139 : vector<1x256xf32> to vector<256xf32>
    %141 = vector.shape_cast %140 : vector<256xf32> to vector<1x256xf32>
    %142 = vector.broadcast %141 : vector<1x256xf32> to vector<8x256xf32>
    %143 = arith.mulf %138, %142 : vector<8x256xf32>
    %144 = vector.extract_strided_slice %82 {offsets = [0, 17], sizes = [8, 239], strides = [1, 1]} : vector<8x256xf32> to vector<8x239xf32>
    %145 = vector.extract_strided_slice %82 {offsets = [0, 0], sizes = [8, 17], strides = [1, 1]} : vector<8x256xf32> to vector<8x17xf32>
    %146 = tpu.concatenate %144, %145 in 1 : vector<8x239xf32>, vector<8x17xf32> -> vector<8x256xf32>
    %c8_35 = arith.constant 8 : index
    %c0_36 = arith.constant 0 : index
    %147 = vector.load %arg1[%c8_35, %c0_36] : memref<9x256xf32, #tpu.memory_space<vmem>>, vector<1x256xf32>
    %148 = vector.shape_cast %147 : vector<1x256xf32> to vector<256xf32>
    %149 = vector.shape_cast %148 : vector<256xf32> to vector<1x256xf32>
    %150 = vector.broadcast %149 : vector<1x256xf32> to vector<8x256xf32>
    %151 = arith.mulf %146, %150 : vector<8x256xf32>
    %152 = tpu.concatenate %90, %98, %106, %114, %119, %127, %135, %143, %151 in 0 : vector<8x256xf32>, vector<8x256xf32>, vector<8x256xf32>, vector<8x256xf32>, vector<8x256xf32>, vector<8x256xf32>, vector<8x256xf32>, vector<8x256xf32>, vector<8x256xf32> -> vector<72x256xf32>
    %153 = arith.truncf %152 : vector<72x256xf32> to vector<72x256xbf16>
    %c0_37 = arith.constant 0 : index
    %c0_38 = arith.constant 0 : index
    %154 = vector.load %arg6[%c0_37, %c0_38] : memref<8x72xbf16, #tpu.memory_space<vmem>>, vector<8x72xbf16>
    %cst_39 = arith.constant dense<0.000000e+00> : vector<8x256xf32>
    %155 = tpu.matmul %154, %153, %cst_39 {dimension_numbers = #tpu.dot_dimension_numbers<[1], [0], [0], [1], [0, 0, 1, 1], [], []>} : vector<8x72xbf16>, vector<72x256xbf16>, vector<8x256xf32> -> vector<8x256xf32>
    %c0_40 = arith.constant 0 : index
    %c0_41 = arith.constant 0 : index
    %156 = vector.load %arg7[%c0_40, %c0_41] : memref<8x1xf32, #tpu.memory_space<vmem>>, vector<8x1xf32>
    %157 = vector.broadcast %156 : vector<8x1xf32> to vector<8x256xf32>
    %158 = arith.mulf %155, %157 : vector<8x256xf32>
    %c0_42 = arith.constant 0 : index
    %c0_43 = arith.constant 0 : index
    %159 = vector.load %arg8[%c0_42, %c0_43] : memref<8x1xf32, #tpu.memory_space<vmem>>, vector<8x1xf32>
    %160 = vector.broadcast %159 : vector<8x1xf32> to vector<8x256xf32>
    %161 = arith.addf %158, %160 : vector<8x256xf32>
    %cst_44 = arith.constant 0.000000e+00 : f32
    %162 = vector.broadcast %cst_44 : f32 to vector<8x256xf32>
    %163 = arith.maximumf %161, %162 : vector<8x256xf32>
    %c0_45 = arith.constant 0 : index
    %c0_46 = arith.constant 0 : index
    %c0_47 = arith.constant 0 : index
    %164 = vector.load %arg9[%c0_45, %c0_46, %c0_47] : memref<1x8x256xf32, #tpu.memory_space<vmem>>, vector<1x8x256xf32>
    %165 = vector.shape_cast %164 : vector<1x8x256xf32> to vector<8x256xf32>
    %166 = vector.shape_cast %163 : vector<8x256xf32> to vector<1x8x256xf32>
    tpu.vector_store %arg9[%c0_45, %c0_46, %c0_47], %166 {strides = array<i32>} : memref<1x8x256xf32, #tpu.memory_space<vmem>>, vector<1x8x256xf32>,
    return
  }
  func.func @transform_0(%arg0: i32) -> (i32, i32) {
    %c0_i32 = arith.constant 0 : i32
    %c0_i32_0 = arith.constant 0 : i32
    %c0_i32_1 = arith.constant 0 : i32
    return %c0_i32, %c0_i32_0 : i32, i32
  }
  func.func @transform_1(%arg0: i32) -> (i32, i32, i32) {
    %c0_i32 = arith.constant 0 : i32
    %c0_i32_0 = arith.constant 0 : i32
    %c0_i32_1 = arith.constant 0 : i32
    return %arg0, %c0_i32, %c0_i32_0 : i32, i32, i32
  }
  func.func @transform_2(%arg0: i32) -> (i32, i32) {
    %c0_i32 = arith.constant 0 : i32
    %c0_i32_0 = arith.constant 0 : i32
    %c0_i32_1 = arith.constant 0 : i32
    return %c0_i32, %c0_i32_0 : i32, i32
  }
  func.func @transform_3(%arg0: i32) -> (i32, i32) {
    %c0_i32 = arith.constant 0 : i32
    %c0_i32_0 = arith.constant 0 : i32
    %c0_i32_1 = arith.constant 0 : i32
    return %c0_i32, %c0_i32_0 : i32, i32
  }
  func.func @transform_4(%arg0: i32) -> (i32, i32) {
    %c0_i32 = arith.constant 0 : i32
    %c0_i32_0 = arith.constant 0 : i32
    %c0_i32_1 = arith.constant 0 : i32
    return %c0_i32, %c0_i32_0 : i32, i32
  }
  func.func @transform_5(%arg0: i32) -> (i32, i32) {
    %c0_i32 = arith.constant 0 : i32
    %c0_i32_0 = arith.constant 0 : i32
    %c0_i32_1 = arith.constant 0 : i32
    return %c0_i32, %c0_i32_0 : i32, i32
  }
  func.func @transform_6(%arg0: i32) -> (i32, i32) {
    %c0_i32 = arith.constant 0 : i32
    %c0_i32_0 = arith.constant 0 : i32
    %c0_i32_1 = arith.constant 0 : i32
    return %c0_i32, %c0_i32_0 : i32, i32
  }
  func.func @transform_7(%arg0: i32) -> (i32, i32) {
    %c0_i32 = arith.constant 0 : i32
    %c0_i32_0 = arith.constant 0 : i32
    %c0_i32_1 = arith.constant 0 : i32
    return %c0_i32, %c0_i32_0 : i32, i32
  }
  func.func @transform_8(%arg0: i32) -> (i32, i32, i32) {
    %c0_i32 = arith.constant 0 : i32
    %c0_i32_0 = arith.constant 0 : i32
    %c0_i32_1 = arith.constant 0 : i32
    return %arg0, %c0_i32, %c0_i32_0 : i32, i32, i32
  }
}

</mosaic_0001>

<bundles_post_ra>
// kernel: double_conv_forward.1
= control target key start
LH: loop header
LB: loop body
LE: loop exit
PB: predicated region body
PF: predicated region fallthrough
CT: control target
= control target key end

     0   :  { %s940_s27 = smov 0   ;;  %s1206_s0 = inlined_call_operand.vmem [shape: f32[9,256], index: 0, kind: input, shape index: {}]   ;;  %s1207_s1 = inlined_call_operand.vmem [shape: f32[2,8,256], index: 1, kind: input, shape index: {}]   ;;  %s1208_s2 = inlined_call_operand.vmem [shape: bf16[8,72], index: 2, kind: input, shape index: {}]   ;;  %s1209_s3 = inlined_call_operand.vmem [shape: f32[8,1], index: 3, kind: input, shape index: {}]   ;;  %s1210_s4 = inlined_call_operand.vmem [shape: f32[8,1], index: 4, kind: input, shape index: {}]   ;;  %s1211_s5 = inlined_call_operand.vmem [shape: bf16[8,72], index: 5, kind: input, shape index: {}]   ;;  %s1212_s6 = inlined_call_operand.vmem [shape: f32[8,1], index: 6, kind: input, shape index: {}]   ;;  %s1213_s7 = inlined_call_operand.vmem [shape: f32[8,1], index: 7, kind: input, shape index: {}]   ;;  %s1214_s8 = inlined_call_operand.vmem [shape: f32[2,8,256], index: 8, kind: output, shape index: {}]  }
   0x1 LB: > { %s834_s28 = sadd.s32 4294967295, %s884_s27   ;;  %p838_p0 = scmp.ge.s32.totalorder %s884_s27, 1  ;;  %s884_s27 = sphi %s940_s27, %s18_s27  }
   0x2   : > { %p262_p1 = scmp.lt.s32.totalorder %s884_s27, 3 }
   0x4   : > { %p263_p2 = pnand %p838_p0, %p262_p1 }
   0x5   : > { %p296_p3 = scmp.lt.s32.totalorder (!%p263_p2), %s834_s28, 1  ;;  %s886_s11 = smov (!%p263_p2), 16   ;;  %v892_v2 = vmov (!%p263_p2), 0   ;;  %v588_v3 = vld [vmem:[%s1209_s3] sm:$0xff] (!%p263_p2)  ;;  %v323_v5 = vlaneseq (!%p263_p2)  ;;  %vm340_vm0 = vcmask (!%p263_p2), 130048   ;;  %vm316_vm1 = vcmask (!%p263_p2), 138240  }
   0x6   : > { %266 = sbr.rel (%p263_p2) target bundleno = 759 (0x2f7), region = 52  ;;  %s887_s12 = smov (!%p263_p2), 17   ;;  %579 = vmatprep.mubr.bf16.mxu0 (!%p263_p2), %v892_v2  ;;  %876 = vset.pattern.permute.xlu0 (!%p263_p2), %v892_v2  ;;  %v596_v4 = vld [vmem:[%s1210_s4] sm:$0xff] (!%p263_p2)  ;;  %vm365_vm2 = vcmask (!%p263_p2), 121856   ;;  %vm390_vm3 = vcmask (!%p263_p2), 7168   ;;  %vm429_vm4 = vcmask (!%p263_p2), 1039360  }
   0x7   : > { %s888_s13 = smov (!%p263_p2), 15   ;;  %s889_s14 = smov (!%p263_p2), 1   ;;  %877 = vset.pattern.permute.xlu1 (!%p263_p2), %v892_v2  ;;  %750 = vmatprep.mubr.bf16.mxu1 (!%p263_p2), %v892_v2  ;;  %v324_v6 = vshrl.u32 (!%p263_p2), %v323_v5, 7  ;;  %v843_v9 = vld [vmem:[%s1206_s0 + $0x1] ss:$8 sm:$0x3] (!%p263_p2) }
   0x8   : > { %s890_s15 = smov (!%p263_p2), 127   ;;  %s891_s16 = smov (!%p263_p2), 113   ;;  %v321_v10 = vld [vmem:[%s1206_s0] ss:$8 sm:$0x3] (!%p263_p2)  ;;  %vm454_vm5 = vcmask (!%p263_p2), 924672  }
   0x9   : > { %s893_s17 = smov (!%p263_p2), 112   ;;  %s894_s18 = smov (!%p263_p2), 111   ;;  %v998_v7 = vsub.s32 (!%p263_p2), 0, %v324_v6  ;;  %v1000_v8 = vsub.s32 (!%p263_p2), 1, %v324_v6  ;;  %vm479_vm6 = vcmask (!%p263_p2), 916480   ;;  %vm504_vm7 = vcmask (!%p263_p2), 908288  }
   0xa   : > { %v844_v27 = vld [vmem:[%s1206_s0 + $0x2] ss:$8 sm:$0x3] (!%p263_p2)  ;;  %v845_v28 = vld [vmem:[%s1206_s0 + $0x3] ss:$8 sm:$0x3] (!%p263_p2) }
   0xb   : > { %v1009_v13 = vrot.slane (!%p263_p2), %v843_v9, %v998_v7  ;;  %v1012_v14 = vrot.slane (!%p263_p2), %v321_v10, %v998_v7  ;;  %v1015_v15 = vrot.slane (!%p263_p2), %v321_v10, %v1000_v8  ;;  %v1018_v16 = vrot.slane (!%p263_p2), %v843_v9, %v1000_v8  ;;  %v846_v33 = vld [vmem:[%s1206_s0 + $0x4] ss:$8 sm:$0x3] (!%p263_p2)  ;;  %v847_v38 = vld [vmem:[%s1206_s0 + $0x5] ss:$8 sm:$0x3] (!%p263_p2) }
   0xc   : > { %v1038_v34 = vrot.slane (!%p263_p2), %v844_v27, %v998_v7  ;;  %v1041_v35 = vrot.slane (!%p263_p2), %v844_v27, %v1000_v8  ;;  %v1044_v36 = vrot.slane (!%p263_p2), %v845_v28, %v998_v7  ;;  %v1047_v37 = vrot.slane (!%p263_p2), %v845_v28, %v1000_v8  ;;  %v848_v63 = vld [vmem:[%s1206_s0 + $0x6] ss:$8 sm:$0x3] (!%p263_p2) }
   0xd   : > { %s1216_s28 = smov (!%p296_p3, %s834_s28), 1  ;;  %v1055_v43 = vrot.slane %v846_v33, %v1000_v8  ;;  %v1058_v44 = vrot.slane %v846_v33, %v998_v7  ;;  %v1063_v47 = vrot.slane %v847_v38, %v998_v7  ;;  %v1066_v48 = vrot.slane %v847_v38, %v1000_v8 }
   0xe   : > { %s857_s29 = sshll.u32 %s1216_s28, 4  ;;  %v1087_v5 = vrot.slane %v848_v63, %v998_v7  ;;  %v1090_v6 = vrot.slane %v848_v63, %v1000_v8  ;;  %vm540_vm8 = vcmask 1043456   ;;  %vm536_vm9 = vcmask 588800  }
   0xf   : > { %s300_s10 = scalar_lea.vmem %s1207_s1, %s857_s29  ;;  %s305_s21 = scalar_lea.vmem %s1214_s8, %s857_s29 }
  0x10   : > { %v956_v0 = vld [vmem:[%s300_s10 + $0x8] sm:$0xff]  ;;  %v962_v1 = vld [vmem:[%s300_s10] sm:$0xff] }
  0x11   : > { %335 = vrot.lane.b32.xlu1 %v956_v0, %s886_s11  ;;  %310 = vrot.lane.b32.xlu0 %v956_v0, %s887_s12  ;;  %v424_v57 = vmul.f32 %v1055_v43, %v956_v0  ;;  %v423_v58 = vmul.f32 %v1058_v44, %v962_v1 }
  0x15   : > { %338 = vrot.lane.b32.xlu1 %v962_v1, %s886_s11  ;;  %314 = vrot.lane.b32.xlu0 %v962_v1, %s887_s12 }
  0x19   : > { %363 = vrot.lane.b32.xlu1 %v962_v1, %s888_s13  ;;  %360 = vrot.lane.b32.xlu0 %v956_v0, %s888_s13 }
  0x1d   : > { %388 = vrot.lane.b32.xlu1 %v962_v1, %s889_s14  ;;  %385 = vrot.lane.b32.xlu0 %v956_v0, %s889_s14 }
  0x21   : > { %427 = vrot.lane.b32.xlu1 %v956_v0, %s890_s15  ;;  %425 = vrot.lane.b32.xlu0 %v962_v1, %s890_s15 }
  0x25   : > { %452 = vrot.lane.b32.xlu1 %v956_v0, %s891_s16  ;;  %450 = vrot.lane.b32.xlu0 %v962_v1, %s891_s16 }
  0x29   : > { %477 = vrot.lane.b32.xlu1 %v956_v0, %s893_s17  ;;  %475 = vrot.lane.b32.xlu0 %v962_v1, %s893_s17 }
  0x2d   : > { %502 = vrot.lane.b32.xlu1 %v956_v0, %s894_s18  ;;  %500 = vrot.lane.b32.xlu0 %v962_v1, %s894_s18  ;;  %v849_v0 = vld [vmem:[%s1206_s0 + $0x7] ss:$8 sm:$0x3] }
  0x2e   : > { %v1093_v9 = vrot.slane %v849_v0, %v998_v7  ;;  %v1096_v10 = vrot.slane %v849_v0, %v1000_v8 }
  0x31   : > { %591 = vperm.xlu0 %876, %v588_v3   ;;  %599 = vperm.xlu1 %877, %v596_v4  }
  0x83   : > { %v336_v11 = vpop.permute.xlu1 %335  ;;  %v311_v12 = vpop.permute.xlu0 %310 }
  0x87   : > { %v339_v17 = vpop.permute.xlu1 %338  ;;  %v315_v18 = vpop.permute.xlu0 %314 }
  0x88   : > { %v341_v19 = vsel %vm340_vm0, %v339_v17, %v336_v11  ;;  %v344_v20 = vsel %vm340_vm0, %v336_v11, %v339_v17  ;;  %v317_v21 = vsel %vm316_vm1, %v315_v18, %v311_v12  ;;  %v320_v22 = vsel %vm316_vm1, %v311_v12, %v315_v18  ;;  %v850_v11 = vld [vmem:[%s1206_s0 + $0x10] ss:$8 sm:$0x3] }
  0x89   : > { %v358_v23 = vmul.f32 %v1009_v13, %v344_v20  ;;  %v333_v24 = vmul.f32 %v1012_v14, %v320_v22  ;;  %v334_v25 = vmul.f32 %v1015_v15, %v317_v21  ;;  %v359_v26 = vmul.f32 %v1018_v16, %v341_v19 }
  0x8a   : > { %v1106_v22 = vrot.slane %v850_v11, %v998_v7 }
  0x8b   : > { %v364_v29 = vpop.permute.xlu1 %363  ;;  %v361_v30 = vpop.permute.xlu0 %360  ;;  %v526_v31 = vpack.c.bf16 %v359_v26, %v334_v25  ;;  %v525_v32 = vpack.c.bf16 %v358_v23, %v333_v24  ;;  %v1109_v23 = vrot.slane %v850_v11, %v1000_v8 }
  0x8c   : > { %v366_v39 = vsel %vm365_vm2, %v364_v29, %v361_v30  ;;  %v369_v40 = vsel %vm365_vm2, %v361_v30, %v364_v29 }
  0x8d   : > { %547 = vmatprep.subr.bf16.mxu0 %v526_v31  ;;  %v383_v49 = vmul.f32 %v1038_v34, %v369_v40  ;;  %v384_v50 = vmul.f32 %v1041_v35, %v366_v39 }
  0x8e   : > { %548 = vmatpush1.bf16.msra.mxu0 %v525_v32 }
  0x8f   : > { %v389_v41 = vpop.permute.xlu1 %388  ;;  %v386_v42 = vpop.permute.xlu0 %385 }
  0x90   : > { %v391_v45 = vsel %vm390_vm3, %v389_v41, %v386_v42  ;;  %v394_v46 = vsel %vm390_vm3, %v386_v42, %v389_v41  ;;  %v535_v41 = vld [vmem:[%s1208_s2] sm:$0xf] }
  0x91   : > { %v408_v51 = vmul.f32 %v1044_v36, %v394_v46  ;;  %v409_v52 = vmul.f32 %v1047_v37, %v391_v45 }
  0x93   : > { %v428_v53 = vpop.permute.xlu1 %427  ;;  %v426_v54 = vpop.permute.xlu0 %425  ;;  %v528_v55 = vpack.c.bf16 %v409_v52, %v384_v50  ;;  %v527_v56 = vpack.c.bf16 %v408_v51, %v383_v49 }
  0x94   : > { %v430_v59 = vsel %vm429_vm4, %v426_v54, %v428_v53  ;;  %v434_v60 = vsel %vm429_vm4, %v428_v53, %v426_v54 }
  0x95   : > { %v448_v61 = vmul.f32 %v1063_v47, %v430_v59  ;;  %v449_v62 = vmul.f32 %v1066_v48, %v434_v60  ;;  %549 = vmatprep.subr.bf16.mxu0 %v528_v55  ;;  %v759_v59 = vld [vmem:[%s1212_s6] sm:$0xff] }
  0x96   : > { %550 = vmatpush1.bf16.msra.mxu0 %v527_v56 }
  0x97   : > { %v453_v2 = vpop.permute.xlu1 %452  ;;  %v451_v1 = vpop.permute.xlu0 %450  ;;  %v530_v3 = vpack.c.bf16 %v449_v62, %v424_v57  ;;  %v529_v4 = vpack.c.bf16 %v448_v61, %v423_v58  ;;  %v767_v58 = vld [vmem:[%s1213_s7] sm:$0xff] }
  0x98   : > { %v455_v12 = vsel %vm454_vm5, %v451_v1, %v453_v2  ;;  %v459_v17 = vsel %vm454_vm5, %v453_v2, %v451_v1 }
  0x99   : > { %551 = vmatprep.subr.bf16.mxu0 %v530_v3  ;;  %v473_v24 = vmul.f32 %v1087_v5, %v455_v12  ;;  %v474_v25 = vmul.f32 %v1090_v6, %v459_v17 }
  0x9a   : > { %552 = vmatpush1.bf16.msra.mxu0 %v529_v4 }
  0x9b   : > { %v478_v18 = vpop.permute.xlu1 %477  ;;  %v476_v19 = vpop.permute.xlu0 %475 }
  0x9c   : > { %v480_v20 = vsel %vm479_vm6, %v476_v19, %v478_v18  ;;  %v484_v21 = vsel %vm479_vm6, %v478_v18, %v476_v19 }
  0x9d   : > { %v498_v26 = vmul.f32 %v1093_v9, %v480_v20  ;;  %v499_v27 = vmul.f32 %v1096_v10, %v484_v21 }
  0x9f   : > { %v503_v28 = vpop.permute.xlu1 %502  ;;  %v501_v29 = vpop.permute.xlu0 %500  ;;  %v532_v30 = vpack.c.bf16 %v499_v27, %v474_v25  ;;  %v531_v31 = vpack.c.bf16 %v498_v26, %v473_v24 }
  0xa0   : > { %v505_v32 = vsel %vm504_vm7, %v501_v29, %v503_v28  ;;  %v509_v7 = vsel %vm504_vm7, %v503_v28, %v501_v29 }
  0xa1   : > { %v523_v33 = vmul.f32 %v1106_v22, %v505_v32  ;;  %v524_v8 = vmul.f32 %v1109_v23, %v509_v7  ;;  %553 = vmatprep.subr.bf16.mxu0 %v532_v30 }
  0xa2   : > { %554 = vmatpush1.bf16.msra.mxu0 %v531_v31 }
  0xa3   : > { %v533_v38 = vpack.c.bf16 %v523_v33, %v523_v33  ;;  %v534_v39 = vpack.c.bf16 %v524_v8, %v524_v8 }
  0xa5   : > { %851 = vmatprep.subr.msk.bf16.mxu0 %vm540_vm8, %v534_v39  ;;  %v542_v40 = vsel %vm540_vm8, %v533_v38, 0 }
  0xa6   : > { %556 = vmatpush1.bf16.msra.mxu0 %v542_v40 }
  0xa9   : > { %852 = vmatmul.mubr.msk.bf16.vlgmr.msra.gmra.mrb[0].mxu0 %vm536_vm9, %v535_v41 }
  0xb0   : > { %v592_v42 = vpop.permute.xlu0 %591  ;;  %v600_v46 = vpop.permute.xlu1 %599 }
 0x17c   : > { %v581_v45 = vpop.f32.mrb[0].mxu0 }
 0x17d   : > { %v594_v49 = vmul.f32 %v592_v42, %v581_v45  ;;  %v583_v50 = vpop.f32.mrb[1].mxu0 }
 0x17e   : > { %v595_v51 = vmul.f32 %v592_v42, %v583_v50  ;;  %v585_v52 = vpop.f32.mrb[2].mxu0 }
 0x17f   : > { %v602_v53 = vadd.f32 %v600_v46, %v594_v49  ;;  %v586_v54 = vpop.f32.mrb[3].mxu0 }
 0x180   : > { %v603_v55 = vadd.f32 %v600_v46, %v595_v51 }
 0x181   : > { %v1125_v56 = vmax.f32 %v602_v53, 0.0 }
 0x182   : > { %v605_v57 = vmax.f32 %v603_v55, 0.0 }
 0x183   : > { %654 = vrot.lane.b32.xlu1 %v1125_v56, %s890_s15  ;;  %611 = vrot.lane.b32.xlu0 %v1125_v56, %s887_s12 }
 0x187   : > { %622 = vrot.lane.b32.xlu0 %v1125_v56, %s886_s11  ;;  %607 = vrot.lane.b32.xlu1 %v605_v57, %s887_s12 }
 0x18b   : > { %633 = vrot.lane.b32.xlu0 %v1125_v56, %s888_s13  ;;  %619 = vrot.lane.b32.xlu1 %v605_v57, %s886_s11 }
 0x18f   : > { %644 = vrot.lane.b32.xlu0 %v1125_v56, %s889_s14  ;;  %630 = vrot.lane.b32.xlu1 %v605_v57, %s888_s13 }
 0x193   : > { %656 = vrot.lane.b32.xlu0 %v605_v57, %s890_s15  ;;  %641 = vrot.lane.b32.xlu1 %v605_v57, %s889_s14 }
 0x197   : > { %667 = vrot.lane.b32.xlu0 %v605_v57, %s891_s16  ;;  %665 = vrot.lane.b32.xlu1 %v1125_v56, %s891_s16 }
 0x19b   : > { %678 = vrot.lane.b32.xlu0 %v605_v57, %s893_s17  ;;  %676 = vrot.lane.b32.xlu1 %v1125_v56, %s893_s17 }
 0x19f   : > { %689 = vrot.lane.b32.xlu0 %v605_v57, %s894_s18  ;;  %687 = vrot.lane.b32.xlu1 %v1125_v56, %s894_s18 }
 0x1a3   : > { %770 = vperm.xlu0 %876, %v767_v58   ;;  %762 = vperm.xlu1 %877, %v759_v59  }
 0x1f5   : > { %v655_v60 = vpop.permute.xlu1 %654  ;;  %v612_v61 = vpop.permute.xlu0 %611 }
 0x1f9   : > { %v623_v62 = vpop.permute.xlu0 %622  ;;  %v608_v63 = vpop.permute.xlu1 %607 }
 0x1fa   : > { %v613_v0 = vsel %vm316_vm1, %v612_v61, %v608_v63  ;;  %v616_v2 = vsel %vm316_vm1, %v608_v63, %v612_v61 }
 0x1fb   : > { %v617_v12 = vmul.f32 %v616_v2, %v1012_v14  ;;  %v618_v18 = vmul.f32 %v613_v0, %v1015_v15 }
 0x1fd   : > { %v634_v1 = vpop.permute.xlu0 %633  ;;  %v620_v3 = vpop.permute.xlu1 %619 }
 0x1fe   : > { %v624_v4 = vsel %vm340_vm0, %v623_v62, %v620_v3  ;;  %v627_v11 = vsel %vm340_vm0, %v620_v3, %v623_v62 }
 0x1ff   : > { %v628_v17 = vmul.f32 %v627_v11, %v1009_v13  ;;  %v629_v19 = vmul.f32 %v624_v4, %v1018_v16 }
 0x201   : > { %v645_v20 = vpop.permute.xlu0 %644  ;;  %v631_v21 = vpop.permute.xlu1 %630  ;;  %v699_v24 = vpack.c.bf16 %v629_v19, %v618_v18  ;;  %v698_v25 = vpack.c.bf16 %v628_v17, %v617_v12 }
 0x202   : > { %v638_v26 = vsel %vm365_vm2, %v631_v21, %v634_v1  ;;  %v635_v27 = vsel %vm365_vm2, %v634_v1, %v631_v21 }
 0x203   : > { %718 = vmatprep.subr.bf16.mxu1 %v699_v24  ;;  %v639_v28 = vmul.f32 %v638_v26, %v1038_v34  ;;  %v640_v13 = vmul.f32 %v635_v27, %v1041_v35  ;;  %v653_v35 = vmul.f32 %v605_v57, %v1055_v43 }
 0x204   : > { %719 = vmatpush1.bf16.msra.mxu1 %v698_v25 }
 0x205   : > { %v657_v29 = vpop.permute.xlu0 %656  ;;  %v642_v14 = vpop.permute.xlu1 %641 }
 0x206   : > { %v662_v15 = vsel %vm429_vm4, %v657_v29, %v655_v60  ;;  %v646_v16 = vsel %vm390_vm3, %v645_v20, %v642_v14  ;;  %v649_v30 = vsel %vm390_vm3, %v642_v14, %v645_v20  ;;  %v658_v31 = vsel %vm429_vm4, %v655_v60, %v657_v29 }
 0x207   : > { %v664_v32 = vmul.f32 %v662_v15, %v1066_v48  ;;  %v650_v7 = vmul.f32 %v649_v30, %v1044_v36  ;;  %v651_v33 = vmul.f32 %v646_v16, %v1047_v37  ;;  %v663_v40 = vmul.f32 %v658_v31, %v1063_v47 }
 0x208   : > { %v652_v36 = vmul.f32 %v1125_v56, %v1058_v44 }
 0x209   : > { %v668_v8 = vpop.permute.xlu0 %667  ;;  %v666_v34 = vpop.permute.xlu1 %665  ;;  %v701_v38 = vpack.c.bf16 %v651_v33, %v640_v13  ;;  %v700_v39 = vpack.c.bf16 %v650_v7, %v639_v28  ;;  %v703_v41 = vpack.c.bf16 %v664_v32, %v653_v35 }
 0x20a   : > { %v669_v42 = vsel %vm454_vm5, %v666_v34, %v668_v8  ;;  %v673_v45 = vsel %vm454_vm5, %v668_v8, %v666_v34  ;;  %v702_v43 = vpack.c.bf16 %v663_v40, %v652_v36 }
 0x20b   : > { %720 = vmatprep.subr.bf16.mxu1 %v701_v38  ;;  %v674_v47 = vmul.f32 %v669_v42, %v1087_v5  ;;  %v675_v50 = vmul.f32 %v673_v45, %v1090_v6 }
 0x20c   : > { %721 = vmatpush1.bf16.msra.mxu1 %v700_v39 }
 0x20d   : > { %v679_v48 = vpop.permute.xlu0 %678  ;;  %v677_v37 = vpop.permute.xlu1 %676  ;;  %722 = vmatprep.subr.bf16.mxu1 %v703_v41 }
 0x20e   : > { %v680_v46 = vsel %vm479_vm6, %v677_v37, %v679_v48  ;;  %v684_v49 = vsel %vm479_vm6, %v679_v48, %v677_v37 }
 0x20f   : > { %v685_v51 = vmul.f32 %v680_v46, %v1093_v9  ;;  %v686_v52 = vmul.f32 %v684_v49, %v1096_v10  ;;  %v708_v10 = vld [vmem:[%s1211_s5] sm:$0xf] }
 0x210   : > { %723 = vmatpush1.bf16.msra.mxu1 %v702_v43 }
 0x211   : > { %v690_v53 = vpop.permute.xlu0 %689  ;;  %v688_v54 = vpop.permute.xlu1 %687  ;;  %v705_v44 = vpack.c.bf16 %v686_v52, %v675_v50  ;;  %v704_v55 = vpack.c.bf16 %v685_v51, %v674_v47 }
 0x212   : > { %v691_v56 = vsel %vm504_vm7, %v688_v54, %v690_v53  ;;  %v695_v57 = vsel %vm504_vm7, %v690_v53, %v688_v54 }
 0x213   : > { %v696_v58 = vmul.f32 %v691_v56, %v1106_v22  ;;  %v697_v59 = vmul.f32 %v695_v57, %v1109_v23  ;;  %724 = vmatprep.subr.bf16.mxu1 %v705_v44 }
 0x214   : > { %725 = vmatpush1.bf16.msra.mxu1 %v704_v55 }
 0x215   : > { %v706_v5 = vpack.c.bf16 %v696_v58, %v696_v58  ;;  %v707_v6 = vpack.c.bf16 %v697_v59, %v697_v59 }
 0x217   : > { %853 = vmatprep.subr.msk.bf16.mxu1 %vm540_vm8, %v707_v6  ;;  %v713_v9 = vsel %vm540_vm8, %v706_v5, 0 }
 0x218   : > { %727 = vmatpush1.bf16.msra.mxu1 %v713_v9 }
 0x21b   : > { %854 = vmatmul.mubr.msk.bf16.vlgmr.msra.gmra.mrb[0].mxu1 %vm536_vm9, %v708_v10 }
 0x222   : > { %v763_v60 = vpop.permute.xlu1 %762  ;;  %v771_v62 = vpop.permute.xlu0 %770 }
 0x2ee   : > { %v752_v22 = vpop.f32.mrb[0].mxu1 }
 0x2ef   : > { %v765_v61 = vmul.f32 %v763_v60, %v752_v22  ;;  %v754_v23 = vpop.f32.mrb[1].mxu1 }
 0x2f0   : > { %v766_v63 = vmul.f32 %v763_v60, %v754_v23  ;;  %v756_v0 = vpop.f32.mrb[2].mxu1 }
 0x2f1   : > { %v773_v2 = vadd.f32 %v771_v62, %v765_v61  ;;  %v757_v1 = vpop.f32.mrb[3].mxu1 }
 0x2f2   : > { %v774_v3 = vadd.f32 %v771_v62, %v766_v63 }
 0x2f3   : > { %v775_v4 = vmax.f32 %v773_v2, 0.0 }
 0x2f4   : > { %v776_v11 = vmax.f32 %v774_v3, 0.0 }
 0x2f5   : > { %777 = vst [vmem:[%s305_s21] sm:$0xff] %v775_v4 }
 0x2f6   : > { %778 = vst [vmem:[%s305_s21 + $0x8] sm:$0xff] %v776_v11 }
 0x2f7 PF: > { %s18_s27 = sadd.s32 1, %s884_s27  }
 0x2f8   : > { %p15_p4 = scmp.ge.s32.totalorder %s18_s27, 4  }
 0x2fa   :  { %17 = sbr.rel (!%p15_p4) target bundleno = 1 (0x1), region = 90 }

</bundles_post_ra>
